<compile_context>
chip_gen: v6e
topology: v6e:2x2x1
jax: 0.10.0
libtpu: 0.0.40
codegen_flags: <defaults>
</compile_context>

<pallas_src>
import jax
import jax.numpy as jnp
from jax.experimental import pallas as pl
from jax.experimental.pallas import tpu as pltpu

_EPS = 1e-9        # torch code's eps on the assignment-mass denominator
_NORM_EPS = 1e-12  # F.normalize default eps


def _round_up(a, b):
    return (a + b - 1) // b * b


def _vmem_cap_bytes():
    """~80% of physical VMEM (v5e/v6e ~102 MiB, v7x ~51 MiB); safe fallback."""
    try:
        cap = int(pltpu.get_tpu_info().vmem_capacity_bytes)
        if cap > 0:
            return max(32 << 20, int(0.8 * cap))
    except Exception:
        pass
    return 48 << 20  # safe on every generation (v7x has 64 MiB physical)


def _estimate_vmem_bytes(tile_n, C, K, c_rows, x_item, a_item):
    return int(
        2 * C * tile_n * x_item            # x input block (double buffered)
        + 2 * K * tile_n * a_item          # soft_assign output block (dbl buf)
        + 2 * C * tile_n * x_item          # [x*x; x] concat
        + c_rows * tile_n * x_item         # [x; ones] concat
        + 5 * K * tile_n * 4               # logits / exp / soft / mask f32 temps
        + K * tile_n * x_item              # soft cast to MXU operand dtype
        + c_rows * K * 4                   # accumulator scratch
        + (K * 2 * C + K + 2 * C * K) * 4  # param blocks
        + (1 << 20))                       # slack


def _choose_tile_n(N, C, K, c_rows, x_item, a_item, vmem_cap,
                   target_x_bytes=4 << 20):
    """Adaptive N tile: ~target_x_bytes of x per buffer, multiple of 128,
    clamped so the whole working set fits the VMEM budget."""
    n128 = _round_up(N, 128)
    tile = max(128, (target_x_bytes // max(1, C * x_item)) // 128 * 128)
    tile = int(min(max(tile, 512), n128))
    tile = max(128, (tile // 128) * 128)
    while (tile > 128 and
           _estimate_vmem_bytes(tile, C, K, c_rows, x_item, a_item)
           > int(0.85 * vmem_cap)):
        tile = max(128, ((tile // 2) // 128) * 128)
    # Prefer a tile that divides round_up(N, 128) to minimize zero-padding.
    t = tile
    while t >= max(128, tile // 2):
        if n128 % t == 0:
            return t
        t -= 128
    return tile


def graph_projection(x_nchw, anchor, sigma_raw, normalize_input=False,
                     assign_dtype=None):
    B, C, H, W = x_nchw.shape
    K = anchor.shape[0]
    N = H * W
    x_dtype = x_nchw.dtype
    assign_dtype = x_dtype if assign_dtype is None else jnp.dtype(assign_dtype)

    # NCHW -> (B, C, N): a pure reshape of the NCHW layout, no HBM transpose.
    x_bcn = x_nchw.reshape(B, C, N)
    if normalize_input:
        # F.normalize(x, p=2, dim=1)
        ss = jnp.sum(x_bcn.astype(jnp.float32) ** 2, axis=1, keepdims=True)
        x_bcn = (x_bcn * jax.lax.rsqrt(jnp.maximum(ss, _NORM_EPS * _NORM_EPS))
                 ).astype(x_dtype)

    # Grid-invariant parameter math hoisted out of the kernel.
    anchor_f = anchor.astype(jnp.float32)
    sig = jax.nn.sigmoid(sigma_raw.astype(jnp.float32))
    inv_sig = 1.0 / sig
    inv_sig2 = inv_sig * inv_sig
    # Fused logits weight: logits = -0.5 * (W @ [x*x; x] + c0)
    w_fused = jnp.concatenate([inv_sig2, -2.0 * anchor_f * inv_sig2],
                              axis=1).astype(x_dtype)                  # (K, 2C)
    c0 = jnp.sum(anchor_f * anchor_f * inv_sig2, axis=1, keepdims=True)  # (K, 1)
    anchor_t = anchor_f.T                                              # (C, K)
    inv_sig_t = inv_sig.T                                              # (C, K)

    c_rows = _round_up(C + 1, 8)   # x rows + ones (mass) row + sublane pad
    c_extra = c_rows - C
    x_item = jnp.dtype(x_dtype).itemsize
    a_item = jnp.dtype(assign_dtype).itemsize

    vmem_cap = _vmem_cap_bytes()
    tile_n = _choose_tile_n(N, C, K, c_rows, x_item, a_item, vmem_cap)
    n_pad = _round_up(N, tile_n)
    n_tiles = n_pad // tile_n
    if n_pad != N:
        # Zero-pad N so every soft_assign store is an unmasked lane-dense vst.
        x_bcn = jnp.pad(x_bcn, ((0, 0), (0, 0), (0, n_pad - N)))

    est = _estimate_vmem_bytes(tile_n, C, K, c_rows, x_item, a_item)
    vmem_limit = int(min(max(2 * est, 32 << 20), vmem_cap))

    def kernel(x_ref, w_ref, c0_ref, anc_t_ref, isig_t_ref,
               nodes_ref, assign_ref, s_acc):
        t = pl.program_id(1)

        @pl.when(t == 0)
        def _init():
            s_acc[...] = jnp.zeros_like(s_acc)

        x = x_ref[0]                                        # (C, Tn), x dtype
        # ---- fused logits matmul: -0.5 * (W @ [x*x; x] + c0) ----
        x_q = jnp.concatenate([x * x, x], axis=0)           # (2C, Tn)
        logits = -0.5 * (jnp.dot(w_ref[...], x_q,
                                 preferred_element_type=jnp.float32)
                         + c0_ref[...])                     # (K, Tn) f32

        # ---- softmax over the node axis K (sublanes), per spatial column ----
        m = jnp.max(logits, axis=0, keepdims=True)          # (1, Tn)
        e = jnp.exp(logits - m)
        soft = e * pl.reciprocal(jnp.sum(e, axis=0, keepdims=True), approx=True)

        # Lane-dense, unmasked store (padded columns sliced off in wrapper).
        assign_ref[0] = soft.astype(assign_ref.dtype)

        if n_pad != N:  # static: padding present -> mask it out of the sums
            col = t * tile_n + jax.lax.broadcasted_iota(jnp.int32, soft.shape, 1)
            soft = jnp.where(col < N, soft, 0.0)

        # ---- accumulate S^T and node mass in ONE matmul ----
        # x_s = [x; ones-row (+zero pad)]  ->  (C+pad, Tn)
        # contract over the lane axis of both operands; the operand Mosaic
        # canonicalizes is the SMALL soft tile, not the big x tile.
        soft_c = soft.astype(x.dtype)
        ones_blk = (jax.lax.broadcasted_iota(jnp.int32, (c_extra, tile_n), 0)
                    == 0).astype(x.dtype)
        x_s = jnp.concatenate([x, ones_blk], axis=0)        # (C+pad, Tn)
        s_acc[...] += jax.lax.dot_general(
            x_s, soft_c, dimension_numbers=(((1,), (1,)), ((), ())),
            preferred_element_type=jnp.float32)             # (C+pad, K)

        @pl.when(t == pl.num_programs(1) - 1)
        def _finalize():
            acc = s_acc[...]
            s_t = acc[:C, :]                                # (C, K): sum soft*x
            mass = acc[C:C + 1, :]                          # (1, K): sum soft
            # nodes^T[c,k] = (S^T - anchor^T*mass) / sigma^T / (mass + eps)
            # Exact divide for the mass denominator (tiny, once per batch).
            nodes_t = ((s_t - anc_t_ref[...] * mass) * isig_t_ref[...]
                       / (mass + _EPS))                     # (C, K) f32
            # per-node L2 normalize over C (F.normalize dim=2)
            nodes_t = nodes_t * jax.lax.rsqrt(
                jnp.maximum(jnp.sum(nodes_t * nodes_t, axis=0, keepdims=True),
                            _NORM_EPS * _NORM_EPS))
            # flat L2 normalize over node_num*C (F.normalize dim=1 on (B,-1))
            nodes_t = nodes_t * jax.lax.rsqrt(
                jnp.maximum(jnp.sum(nodes_t * nodes_t),
                            _NORM_EPS * _NORM_EPS))
            nodes_ref[0] = nodes_t.astype(nodes_ref.dtype)

    # TODO(synk): on v7x (2 TensorCores per chip) with B == 1, additionally
    # split the N-tile axis across cores (per-core partial accumulators + a
    # tiny combine pass) so the second core is not idle.
    nodes_t_out, soft_assign = pl.pallas_call(
        kernel,
        out_shape=(jax.ShapeDtypeStruct((B, C, K), x_dtype),
                   jax.ShapeDtypeStruct((B, K, n_pad), assign_dtype)),
        grid_spec=pltpu.PrefetchScalarGridSpec(
            num_scalar_prefetch=0,
            grid=(B, n_tiles),
            in_specs=[
                pl.BlockSpec((1, C, tile_n), lambda b, t: (b, 0, t)),
                pl.BlockSpec((K, 2 * C), lambda b, t: (0, 0)),
                pl.BlockSpec((K, 1), lambda b, t: (0, 0)),
                pl.BlockSpec((C, K), lambda b, t: (0, 0)),
                pl.BlockSpec((C, K), lambda b, t: (0, 0)),
            ],
            out_specs=[
                pl.BlockSpec((1, C, K), lambda b, t: (b, 0, 0)),
                pl.BlockSpec((1, K, tile_n), lambda b, t: (b, 0, t)),
            ],
            scratch_shapes=[pltpu.VMEM((c_rows, K), jnp.float32)]),
        compiler_params=pltpu.CompilerParams(
            dimension_semantics=("parallel", "arbitrary"),
            vmem_limit_bytes=vmem_limit),
    )(x_bcn, w_fused, c0, anchor_t, inv_sig_t)

    # Kernel emits nodes^T (B, C, K); the torch module does
    # nodes(B,K,C).view(B,-1).view(B,C,K) — a reinterpretation.  Reproduce it
    # with a tiny (K*C-element) transpose + reshape in the wrapper.
    nodes_out = jnp.transpose(nodes_t_out, (0, 2, 1)).reshape(B, C, K)
    if n_pad != N:
        soft_assign = soft_assign[:, :, :N]
    return nodes_out, soft_assign


def graph_projection_reference(x, anchor, sigma_raw):
    """Pure-JAX reference matching the PyTorch forward exactly."""
    B, C, H, W = x.shape
    N = H * W
    sig = jax.nn.sigmoid(sigma_raw)
    xf = jnp.transpose(x.reshape(B, C, N), (0, 2, 1))                        # (B,N,C)
    resid = (xf[:, None, :, :] - anchor[None, :, None, :]) / sig[None, :, None, :]
    logits = -0.5 * jnp.sum(resid * resid, axis=-1)                          # (B,K,N)
    soft = jax.nn.softmax(logits, axis=1)
    num = jnp.sum(resid * soft[..., None], axis=2)                           # (B,K,C)
    den = jnp.sum(soft, axis=2)[..., None] + 1e-9
    nodes = num / den
    nodes = nodes / jnp.maximum(
        jnp.linalg.norm(nodes, axis=-1, keepdims=True), 1e-12)
    flat = nodes.reshape(B, -1)
    flat = flat / jnp.maximum(
        jnp.linalg.norm(flat, axis=-1, keepdims=True), 1e-12)
    return flat.reshape(B, C, anchor.shape[0]), soft


if __name__ == "__main__":
    # Small shapes consistent with the module: x (B, C, H, W), dim == C.
    B, C, H, W = 2, 32, 8, 8
    node_num, dim = 8, C

    key = jax.random.PRNGKey(0)
    kx, ka, ks = jax.random.split(key, 3)
    x = jax.random.normal(kx, (B, C, H, W), dtype=jnp.float32)
    # torch.rand(node_num, dim) -> uniform [0, 1)
    anchor = jax.random.uniform(ka, (node_num, dim), dtype=jnp.float32)
    sigma_raw = jax.random.uniform(ks, (node_num, dim), dtype=jnp.float32)

    nodes, soft_assign = graph_projection(x, anchor, sigma_raw)
    jax.block_until_ready((nodes, soft_assign))

    nodes_ref, soft_ref = graph_projection_reference(x, anchor, sigma_raw)
    assert nodes.shape == (B, C, node_num)
    assert soft_assign.shape == (B, node_num, H * W)
    # Tolerance accommodates the EUP approximate reciprocal used for the
    # softmax denominator (mass denominator now uses an exact divide).
    assert jnp.allclose(nodes, nodes_ref, atol=2e-3, rtol=2e-3)
    assert jnp.allclose(soft_assign, soft_ref, atol=2e-3, rtol=2e-3)

    print("KERNEL_OK")
</pallas_src>

<mosaic_0001>
module attributes {stable_mosaic.version = 11 : i64} {
  func.func @kernel(%arg0: i32, %arg1: i32, %arg2: memref<1x32x128xf32, #tpu.memory_space<vmem>>, %arg3: memref<8x64xf32, #tpu.memory_space<vmem>>, %arg4: memref<8x1xf32, #tpu.memory_space<vmem>>, %arg5: memref<32x8xf32, #tpu.memory_space<vmem>>, %arg6: memref<32x8xf32, #tpu.memory_space<vmem>>, %arg7: memref<1x32x8xf32, #tpu.memory_space<vmem>>, %arg8: memref<1x8x128xf32, #tpu.memory_space<vmem>>, %arg9: memref<40x8xf32, #tpu.memory_space<vmem>>) attributes {dimension_semantics = [#tpu.dimension_semantics<parallel>, #tpu.dimension_semantics<arbitrary>], iteration_bounds = array<i64: 2, 1>, scalar_prefetch = 0 : i64, scratch_operands = 1 : i64, tpu.core_type = #tpu.core_type<tc>, window_params = [{transform_indices = @transform_0, window_bounds = array<i64: 1, 32, 128>}, {pipeline_mode = #tpu.pipeline_mode<synchronous>, transform_indices = @transform_1, window_bounds = array<i64: 8, 64>}, {pipeline_mode = #tpu.pipeline_mode<synchronous>, transform_indices = @transform_2, window_bounds = array<i64: 8, 1>}, {pipeline_mode = #tpu.pipeline_mode<synchronous>, transform_indices = @transform_3, window_bounds = array<i64: 32, 8>}, {pipeline_mode = #tpu.pipeline_mode<synchronous>, transform_indices = @transform_4, window_bounds = array<i64: 32, 8>}, {transform_indices = @transform_5, window_bounds = array<i64: 1, 32, 8>}, {transform_indices = @transform_6, window_bounds = array<i64: 1, 8, 128>}]} {
    %c0_i32 = arith.constant 0 : i32
    %0 = arith.cmpi eq, %arg1, %c0_i32 : i32
    %1 = arith.extui %0 : i1 to i32
    %c0_i32_0 = arith.constant 0 : i32
    %2 = arith.cmpi ne, %1, %c0_i32_0 : i32
    scf.if %2 {
      %cst_22 = arith.constant 0.000000e+00 : f32
      %48 = vector.broadcast %cst_22 : f32 to vector<40x8xf32>
      %c0_23 = arith.constant 0 : index
      %c0_24 = arith.constant 0 : index
      %49 = vector.load %arg9[%c0_23, %c0_24] : memref<40x8xf32, #tpu.memory_space<vmem>>, vector<40x8xf32>
      tpu.vector_store %arg9[%c0_23, %c0_24], %48 {strides = array<i32>} : memref<40x8xf32, #tpu.memory_space<vmem>>, vector<40x8xf32>,
    } else {
    }
    %c0 = arith.constant 0 : index
    %c0_1 = arith.constant 0 : index
    %c0_2 = arith.constant 0 : index
    %3 = vector.load %arg2[%c0, %c0_1, %c0_2] : memref<1x32x128xf32, #tpu.memory_space<vmem>>, vector<1x32x128xf32>
    %4 = vector.shape_cast %3 : vector<1x32x128xf32> to vector<32x128xf32>
    %5 = arith.mulf %4, %4 : vector<32x128xf32>
    %6 = tpu.concatenate %5, %4 in 0 : vector<32x128xf32>, vector<32x128xf32> -> vector<64x128xf32>
    %c0_3 = arith.constant 0 : index
    %c0_4 = arith.constant 0 : index
    %7 = vector.load %arg3[%c0_3, %c0_4] : memref<8x64xf32, #tpu.memory_space<vmem>>, vector<8x64xf32>
    %cst = arith.constant dense<0.000000e+00> : vector<8x128xf32>
    %8 = tpu.matmul %7, %6, %cst {dimension_numbers = #tpu.dot_dimension_numbers<[1], [0], [0], [1], [0, 0, 1, 1], [], []>} : vector<8x64xf32>, vector<64x128xf32>, vector<8x128xf32> -> vector<8x128xf32>
    %c0_5 = arith.constant 0 : index
    %c0_6 = arith.constant 0 : index
    %9 = vector.load %arg4[%c0_5, %c0_6] : memref<8x1xf32, #tpu.memory_space<vmem>>, vector<8x1xf32>
    %10 = vector.broadcast %9 : vector<8x1xf32> to vector<8x128xf32>
    %11 = arith.addf %8, %10 : vector<8x128xf32>
    %cst_7 = arith.constant -5.000000e-01 : f32
    %12 = vector.broadcast %cst_7 : f32 to vector<8x128xf32>
    %13 = arith.mulf %12, %11 : vector<8x128xf32>
    %cst_8 = arith.constant dense<0xFF800000> : vector<128xf32>
    %14 = vector.multi_reduction <maximumf>, %13, %cst_8 [0] : vector<8x128xf32> to vector<128xf32>
    %15 = vector.shape_cast %14 : vector<128xf32> to vector<1x128xf32>
    %16 = vector.broadcast %15 : vector<1x128xf32> to vector<8x128xf32>
    %17 = arith.subf %13, %16 : vector<8x128xf32>
    %18 = math.exp %17 : vector<8x128xf32>
    %cst_9 = arith.constant dense<0.000000e+00> : vector<128xf32>
    %19 = vector.multi_reduction <add>, %18, %cst_9 [0] : vector<8x128xf32> to vector<128xf32>
    %20 = vector.shape_cast %19 : vector<128xf32> to vector<1x128xf32>
    %21 = tpu.reciprocal %20 {approx = true} : vector<1x128xf32> -> vector<1x128xf32>
    %22 = vector.broadcast %21 : vector<1x128xf32> to vector<8x128xf32>
    %23 = arith.mulf %18, %22 : vector<8x128xf32>
    %c0_10 = arith.constant 0 : index
    %c0_11 = arith.constant 0 : index
    %c0_12 = arith.constant 0 : index
    %24 = vector.load %arg8[%c0_10, %c0_11, %c0_12] : memref<1x8x128xf32, #tpu.memory_space<vmem>>, vector<1x8x128xf32>
    %25 = vector.shape_cast %24 : vector<1x8x128xf32> to vector<8x128xf32>
    %26 = vector.shape_cast %23 : vector<8x128xf32> to vector<1x8x128xf32>
    tpu.vector_store %arg8[%c0_10, %c0_11, %c0_12], %26 {strides = array<i32>} : memref<1x8x128xf32, #tpu.memory_space<vmem>>, vector<1x8x128xf32>,
    %c128_i32 = arith.constant 128 : i32
    %27 = arith.muli %arg1, %c128_i32 : i32
    %28 = tpu.iota {dimensions = array<i32: 1>} : vector<8x128xi32>
    %29 = vector.broadcast %27 : i32 to vector<8x128xi32>
    %30 = arith.addi %29, %28 : vector<8x128xi32>
    %c64_i32 = arith.constant 64 : i32
    %31 = vector.broadcast %c64_i32 : i32 to vector<8x128xi32>
    %32 = arith.cmpi slt, %30, %31 : vector<8x128xi32>
    %cst_13 = arith.constant 0.000000e+00 : f32
    %33 = vector.broadcast %cst_13 : f32 to vector<8x128xf32>
    %34 = arith.select %32, %23, %33 : vector<8x128xi1>, vector<8x128xf32>
    %35 = tpu.iota {dimensions = array<i32: 0>} : vector<8x128xi32>
    %c0_i32_14 = arith.constant 0 : i32
    %36 = vector.broadcast %c0_i32_14 : i32 to vector<8x128xi32>
    %37 = arith.cmpi eq, %35, %36 : vector<8x128xi32>
    %38 = arith.extui %37 : vector<8x128xi1> to vector<8x128xi32>
    %39 = arith.sitofp %38 : vector<8x128xi32> to vector<8x128xf32>
    %40 = tpu.concatenate %4, %39 in 0 : vector<32x128xf32>, vector<8x128xf32> -> vector<40x128xf32>
    %c0_15 = arith.constant 0 : index
    %c0_16 = arith.constant 0 : index
    %41 = vector.load %arg9[%c0_15, %c0_16] : memref<40x8xf32, #tpu.memory_space<vmem>>, vector<40x8xf32>
    %cst_17 = arith.constant dense<0.000000e+00> : vector<40x8xf32>
    %42 = tpu.matmul %40, %34, %cst_17 {dimension_numbers = #tpu.dot_dimension_numbers<[1], [1], [0], [0], [0, 0, 1, 0], [], []>} : vector<40x128xf32>, vector<8x128xf32>, vector<40x8xf32> -> vector<40x8xf32>
    %43 = arith.addf %41, %42 : vector<40x8xf32>
    %c0_18 = arith.constant 0 : index
    %c0_19 = arith.constant 0 : index
    %44 = vector.load %arg9[%c0_18, %c0_19] : memref<40x8xf32, #tpu.memory_space<vmem>>, vector<40x8xf32>
    tpu.vector_store %arg9[%c0_18, %c0_19], %43 {strides = array<i32>} : memref<40x8xf32, #tpu.memory_space<vmem>>, vector<40x8xf32>,
    %c0_i32_20 = arith.constant 0 : i32
    %45 = arith.cmpi eq, %arg1, %c0_i32_20 : i32
    %46 = arith.extui %45 : i1 to i32
    %c0_i32_21 = arith.constant 0 : i32
    %47 = arith.cmpi ne, %46, %c0_i32_21 : i32
    scf.if %47 {
      %c0_22 = arith.constant 0 : index
      %c0_23 = arith.constant 0 : index
      %48 = vector.load %arg9[%c0_22, %c0_23] : memref<40x8xf32, #tpu.memory_space<vmem>>, vector<40x8xf32>
      %49 = vector.extract_strided_slice %48 {offsets = [0, 0], sizes = [32, 8], strides = [1, 1]} : vector<40x8xf32> to vector<32x8xf32>
      %50 = vector.extract_strided_slice %48 {offsets = [32, 0], sizes = [1, 8], strides = [1, 1]} : vector<40x8xf32> to vector<1x8xf32>
      %c0_24 = arith.constant 0 : index
      %c0_25 = arith.constant 0 : index
      %51 = vector.load %arg5[%c0_24, %c0_25] : memref<32x8xf32, #tpu.memory_space<vmem>>, vector<32x8xf32>
      %52 = vector.broadcast %50 : vector<1x8xf32> to vector<32x8xf32>
      %53 = arith.mulf %51, %52 : vector<32x8xf32>
      %54 = arith.subf %49, %53 : vector<32x8xf32>
      %c0_26 = arith.constant 0 : index
      %c0_27 = arith.constant 0 : index
      %55 = vector.load %arg6[%c0_26, %c0_27] : memref<32x8xf32, #tpu.memory_space<vmem>>, vector<32x8xf32>
      %56 = arith.mulf %54, %55 : vector<32x8xf32>
      %cst_28 = arith.constant 9.99999971E-10 : f32
      %57 = vector.broadcast %cst_28 : f32 to vector<1x8xf32>
      %58 = arith.addf %50, %57 : vector<1x8xf32>
      %59 = vector.broadcast %58 : vector<1x8xf32> to vector<32x8xf32>
      %60 = arith.divf %56, %59 : vector<32x8xf32>
      %61 = arith.mulf %60, %60 : vector<32x8xf32>
      %cst_29 = arith.constant dense<0.000000e+00> : vector<8xf32>
      %62 = vector.multi_reduction <add>, %61, %cst_29 [0] : vector<32x8xf32> to vector<8xf32>
      %63 = vector.shape_cast %62 : vector<8xf32> to vector<1x8xf32>
      %cst_30 = arith.constant 1.000000e-24 : f32
      %64 = vector.broadcast %cst_30 : f32 to vector<1x8xf32>
      %65 = arith.maximumf %63, %64 : vector<1x8xf32>
      %66 = math.rsqrt %65 : vector<1x8xf32>
      %67 = vector.broadcast %66 : vector<1x8xf32> to vector<32x8xf32>
      %68 = arith.mulf %60, %67 : vector<32x8xf32>
      %69 = arith.mulf %68, %68 : vector<32x8xf32>
      %70 = vector.shape_cast %69 : vector<32x8xf32> to vector<1x32x8xf32>
      %cst_31 = arith.constant dense<0.000000e+00> : vector<1xf32>
      %71 = vector.multi_reduction <add>, %70, %cst_31 [1, 2] : vector<1x32x8xf32> to vector<1xf32>
      %72 = vector.shape_cast %71 : vector<1xf32> to vector<1x1x1xf32>
      %73 = vector.extract %72[0, 0, 0] : f32 from vector<1x1x1xf32>
      %cst_32 = arith.constant 1.000000e-24 : f32
      %74 = arith.maximumf %73, %cst_32 : f32
      %75 = math.rsqrt %74 : f32
      %76 = vector.broadcast %75 : f32 to vector<32x8xf32>
      %77 = arith.mulf %68, %76 : vector<32x8xf32>
      %c0_33 = arith.constant 0 : index
      %c0_34 = arith.constant 0 : index
      %c0_35 = arith.constant 0 : index
      %78 = vector.load %arg7[%c0_33, %c0_34, %c0_35] : memref<1x32x8xf32, #tpu.memory_space<vmem>>, vector<1x32x8xf32>
      %79 = vector.shape_cast %78 : vector<1x32x8xf32> to vector<32x8xf32>
      %80 = vector.shape_cast %77 : vector<32x8xf32> to vector<1x32x8xf32>
      tpu.vector_store %arg7[%c0_33, %c0_34, %c0_35], %80 {strides = array<i32>} : memref<1x32x8xf32, #tpu.memory_space<vmem>>, vector<1x32x8xf32>,
    } else {
    }
    return
  }
  func.func @transform_0(%arg0: i32, %arg1: i32) -> (i32, i32, i32) {
    %c0_i32 = arith.constant 0 : i32
    %c0_i32_0 = arith.constant 0 : i32
    return %arg0, %c0_i32, %arg1 : i32, i32, i32
  }
  func.func @transform_1(%arg0: i32, %arg1: i32) -> (i32, i32) {
    %c0_i32 = arith.constant 0 : i32
    %c0_i32_0 = arith.constant 0 : i32
    %c0_i32_1 = arith.constant 0 : i32
    return %c0_i32, %c0_i32_0 : i32, i32
  }
  func.func @transform_2(%arg0: i32, %arg1: i32) -> (i32, i32) {
    %c0_i32 = arith.constant 0 : i32
    %c0_i32_0 = arith.constant 0 : i32
    %c0_i32_1 = arith.constant 0 : i32
    return %c0_i32, %c0_i32_0 : i32, i32
  }
  func.func @transform_3(%arg0: i32, %arg1: i32) -> (i32, i32) {
    %c0_i32 = arith.constant 0 : i32
    %c0_i32_0 = arith.constant 0 : i32
    %c0_i32_1 = arith.constant 0 : i32
    return %c0_i32, %c0_i32_0 : i32, i32
  }
  func.func @transform_4(%arg0: i32, %arg1: i32) -> (i32, i32) {
    %c0_i32 = arith.constant 0 : i32
    %c0_i32_0 = arith.constant 0 : i32
    %c0_i32_1 = arith.constant 0 : i32
    return %c0_i32, %c0_i32_0 : i32, i32
  }
  func.func @transform_5(%arg0: i32, %arg1: i32) -> (i32, i32, i32) {
    %c0_i32 = arith.constant 0 : i32
    %c0_i32_0 = arith.constant 0 : i32
    %c0_i32_1 = arith.constant 0 : i32
    return %arg0, %c0_i32, %c0_i32_0 : i32, i32, i32
  }
  func.func @transform_6(%arg0: i32, %arg1: i32) -> (i32, i32, i32) {
    %c0_i32 = arith.constant 0 : i32
    %c0_i32_0 = arith.constant 0 : i32
    return %arg0, %c0_i32, %arg1 : i32, i32, i32
  }
}

</mosaic_0001>

<bundles_post_ra>
// kernel: tpu_custom_call.1
= control target key start
LH: loop header
LB: loop body
LE: loop exit
PB: predicated region body
PF: predicated region fallthrough
CT: control target
= control target key end

     0   :  { %12 = vsyncpa [#allocation4], 0  ;;  %s1239_s0 = inlined_call_operand.vmem [shape: f32[2,32,128], index: 0, kind: input, shape index: {}]   ;;  %s1240_s1 = inlined_call_operand.vmem [shape: f32[8,64], index: 1, kind: input, shape index: {}]   ;;  %s1241_s2 = inlined_call_operand.vmem [shape: f32[8,1], index: 2, kind: input, shape index: {}]   ;;  %s1242_s3 = inlined_call_operand.vmem [shape: f32[32,8], index: 3, kind: input, shape index: {}]   ;;  %s1243_s4 = inlined_call_operand.vmem [shape: f32[32,8], index: 4, kind: input, shape index: {}]   ;;  %s1244_s5 = inlined_call_operand.vmem [shape: f32[2,32,8], index: 5, kind: output, shape index: {0}]   ;;  %s1245_s6 = inlined_call_operand.hbm [shape: f32[2,8,128], index: 6, kind: output, shape index: {1}]  }
   0x1   :  { %14 = vsyncpa [#allocation4 + $0x1], 0  ;;  %s1009_s21 = smov 0   ;;  %s1011_s22 = smov 0  }
   0x2   :  { %s1013_s23 = smov 0   ;;  %s1015_s24 = smov 0  }
   0x3   :  { %s1017_s25 = smov 0   ;;  %s1019_s26 = smov 0  }
   0x4 LB: > { %s744_s27 = sadd.s32 4294967295, %s966_s26   ;;  %s745_s28 = sadd.s32 4294967294, %s966_s26   ;;  %s966_s26 = sphi %s1019_s26, %s20_s26   ;;  %s962_s25 = sphi %s1017_s25, %s1252_s25   ;;  %s958_s24 = sphi %s1015_s24, %s1251_s24   ;;  %s954_s23 = sphi %s1013_s23, %s1250_s23   ;;  %s950_s22 = sphi %s1011_s22, %s1249_s22   ;;  %s946_s21 = sphi %s1009_s21, %s1248_s21  }
   0x5   : > { %s32_s29 = sadd.s32 1, %s962_s25  ;;  %s179_s30 = sadd.s32 1, %s954_s23 }
   0x6   : > { %p34_p0 = scmp.ge.s32.totalorder %s32_s29, 2  ;;  %p189_p1 = scmp.ne.s32.totalorder %s954_s23, %s950_s22 }
   0x7   : > { %p190_p2 = scmp.eq.s32.totalorder %s744_s27, 1  ;;  %p195_p3 = scmp.ne.s32.totalorder %s950_s22, %s946_s21 }
   0x8   : > { %s1254_s29 = smov (%p34_p0, %s32_s29), 0  ;;  %p196_p5 = scmp.eq.s32.totalorder %s745_s28, 1 }
   0x9   : > { %p1049_p4 = por %p190_p2, %p189_p1  ;;  %s174_s8 = ssub.s32 %s962_s25, %s1254_s29 }
   0xa   : > { %p748_p6 = scmp.ge.s32.totalorder %s966_s26, 1  ;;  %p177_p7 = scmp.eq.s32.totalorder %s174_s8, 0 }
   0xb   : > { %p1056_p8 = por %p196_p5, %p195_p3  ;;  %p237_p9 = scmp.lt.s32.totalorder %s966_s26, 3 }
   0xc   : > { %s1062_s10 = scalar_select %p177_p7, %s954_s23, %s179_s30  }
   0xd   : > { %p238_p10 = pnand %p748_p6, %p237_p9 }
   0xe   : > { %p275_p11 = scmp.lt.s32.totalorder (!%p238_p10), %s958_s24, 1  ;;  %s272_s20 = sand.u32 (!%p238_p10), 1, %s950_s22  }
   0xf   : > { %241 = sbr.rel (%p238_p10) target bundleno = 866 (0x362), region = 40  ;;  %s1116_s27 = sshll.u32 (!%p238_p10), %s272_s20, 3 }
  0x10   : > { %s274_s28 = scalar_lea.vmem (!%p238_p10), [#allocation3], %s1116_s27  ;;  %s759_s18 = sshll.u32 (!%p238_p10), %s958_s24, 7 }
  0x11   : > { %s645_s19 = sshll.u32 (!%p238_p10), %s274_s28, 4  ;;  %s643_s11 = scalar_lea.hbm (!%p238_p10), %s1245_s6, %s759_s18  ;;  %s646_s19 = int_to_ptr.vmem [resolvable:$true] %s645_s19 }
  0x12   : > { %s628_s12 = scalar_lea.sflag (!%p238_p10), [#allocation4], %s272_s20  ;;  %s890_s15 = scalar_lea.vmem (!%p238_p10), %s646_s19, 128 }
  0x13   : > { %p891_p12 = scmp.ne.s32.totalorder (!%p238_p10), %s646_s19, %s890_s15  ;;  %s972_s16 = smov (!%p238_p10), [#allocation3]  }
  0x14   : > { %v968_v0 = vmov 0.0   ;;  %vm969_vm0 = vmmov 0   ;;  %v307_v1 = vld [vmem:[%s1241_s2] sm:$0xff]  ;;  %s1072_s13 = scalar_select %p275_p11, %s958_s24, 1  ;;  %v970_v2 = vmov 0   ;;  %vm313_vm1 = vcmask 523264  }
  0x15   : > { %779 = vmatprep.subr.mxu0 %v968_v0  ;;  %795 = vmatprep.mubr.msk.f32.mxu0 %vm969_vm0, %v968_v0  ;;  %v306_v11 = vld [vmem:[%s1240_s1] sm:$0xff]  ;;  %vm292_vm2 = vcmask 64512   ;;  %v407_v32 = vlaneseq  ;;  %v971_v37 = vmov 1.0   ;;  %p892_p13 = pnand %p891_p12, %p1049_p4 }
  0x16   : > { %879 = vset.pattern.permute.xlu0 %v970_v2  ;;  %798 = vmatprep.subr.mxu1 %v968_v0  ;;  %s762_s14 = sshll.u32 %s1072_s13, 5  ;;  %293 = vst.msk [vmem:[#allocation2] sm:$0xff] %vm292_vm2, %v968_v0  ;;  %294 = vst.msk [vmem:[#allocation2 + $0x8] sm:$0xff] %vm292_vm2, %v968_v0  ;;  %v532_v62 = vld [vmem:[%s1242_s3] sm:$0xff]  ;;  %v535_v2 = vld [vmem:[%s1242_s3 + $0x18] sm:$0xff] }
  0x17   : > { %310 = vperm.xlu0 %879, %v307_v1   ;;  %800 = vmatprep.mubr.msk.f32.mxu1 %vm969_vm0, %v968_v0  ;;  %s282_s17 = scalar_lea.vmem %s1239_s0, %s762_s14  ;;  %295 = vst.msk [vmem:[#allocation2 + $0x10] sm:$0xff] %vm292_vm2, %v968_v0  ;;  %296 = vst.msk [vmem:[#allocation2 + $0x18] sm:$0xff] %vm292_vm2, %v968_v0  ;;  %v408_v33 = vand.u32 127, %v407_v32  ;;  %v414_v36 = vshrl.u32 %v407_v32, 7  ;;  %v534_v1 = vld [vmem:[%s1242_s3 + $0x10] sm:$0xff]  ;;  %p893_p0 = pneg %p892_p13 }
  0x18   : > { %v1083_v3 = vld [vmem:[%s282_s17 + $0x18] sm:$0xff]  ;;  %v1085_v4 = vld [vmem:[%s282_s17 + $0x10] sm:$0xff]  ;;  %v299_v5 = vld [vmem:[%s282_s17 + $0x8] sm:$0xff]  ;;  %297 = vst.msk [vmem:[#allocation2 + $0x20] sm:$0xff] %vm292_vm2, %v968_v0 }
  0x19   : > { %780 = vmatpush3.msra.mxu0 %v1083_v3  ;;  %v298_v6 = vld [vmem:[%s282_s17] sm:$0xff]  ;;  %v305_v7 = vmul.f32 %v1083_v3, %v1083_v3  ;;  %v304_v8 = vmul.f32 %v1085_v4, %v1085_v4  ;;  %v303_v9 = vmul.f32 %v299_v5, %v299_v5  ;;  %vm411_vm3 = vcmp.lt.s32.totalorder %v408_v33, 64  ;;  %s894_s17 = sshll.u32 %s972_s16, 4  ;;  %s895_s17 = int_to_ptr.vmem [resolvable:$false] %s894_s17 }
  0x1a   : > { %781 = vmatprep.subr.mxu0 %v968_v0  ;;  %v302_v10 = vmul.f32 %v298_v6, %v298_v6  ;;  %vm415_vm4 = vcmp.eq.s32.totalorder %v414_v36, 0  ;;  %v538_v60 = vsub.s32 0, %v414_v36  ;;  %s896_s24 = scalar_lea.vmem %s895_s17, 256  ;;  %p897_p1 = scmp.lt.s32.totalorder %s646_s19, %s895_s17 }
  0x1b   : > { %782 = vmatpush3.msra.mxu0 %v1085_v4  ;;  %p898_p2 = scmp.lt.s32.totalorder %s896_s24, %s890_s15 }
  0x1c   : > { %783 = vmatprep.subr.mxu0 %v968_v0 }
  0x1d   : > { %784 = vmatpush3.msra.mxu0 %v299_v5  ;;  %v418_v38 = vld [vmem:[#allocation2] sm:$0xff]  ;;  %v419_v42 = vld [vmem:[#allocation2 + $0x8] sm:$0xff]  ;;  %p899_p3 = por %p898_p2, %p897_p1 }
  0x1e   : > { %785 = vmatprep.subr.mxu0 %v968_v0  ;;  %v420_v46 = vld [vmem:[#allocation2 + $0x10] sm:$0xff]  ;;  %v421_v50 = vld [vmem:[#allocation2 + $0x18] sm:$0xff] }
  0x1f   : > { %786 = vmatpush3.msra.mxu0 %v298_v6  ;;  %v422_v54 = vld [vmem:[#allocation2 + $0x20] sm:$0xff]  ;;  %p900_p5 = pnand %p899_p3, %p893_p0 }
  0x20   : > { %787 = vmatprep.subr.mxu0 %v968_v0 }
  0x21   : > { %788 = vmatpush3.msra.mxu0 %v305_v7 }
  0x22   : > { %789 = vmatprep.subr.mxu0 %v968_v0 }
  0x23   : > { %790 = vmatpush3.msra.mxu0 %v304_v8 }
  0x24   : > { %791 = vmatprep.subr.mxu0 %v968_v0 }
  0x25   : > { %792 = vmatpush3.msra.mxu0 %v303_v9 }
  0x26   : > { %793 = vmatprep.subr.mxu0 %v968_v0 }
  0x27   : > { %794 = vmatpush3.msra.mxu0 %v302_v10 }
  0x28   : > { %796 = vmatmul.mubr.msk.f32.vlgmr.msra.gmra.mxu0 %vm313_vm1, %v306_v11 }
  0x92   : > { %v311_v12 = vpop.permute.xlu0 %310 }
  0xe8   : > { %v383_v13 = vpop.f32.mrf.mxu0 }
  0xe9   : > { %v384_v14 = vadd.f32 %v383_v13, %v311_v12 }
  0xea   : > { %v797_v15 = vpop.f32.mrf.mxu0 }
  0xeb   : > { %v387_v16 = vmul.f32 -0.5, %v384_v14  ;;  %v548_v15 = vld [vmem:[%s1243_s4] sm:$0xff] }
  0xed   : > { %v388_v17 = vrot.slane %v387_v16, 4 }
  0xef   : > { %v389_v18 = vmax.f32 %v387_v16, %v388_v17  ;;  %v550_v17 = vld [vmem:[%s1243_s4 + $0x10] sm:$0xff] }
  0xf1   : > { %v390_v19 = vrot.slane %v389_v18, 2 }
  0xf3   : > { %v391_v20 = vmax.f32 %v389_v18, %v390_v19  ;;  %v551_v18 = vld [vmem:[%s1243_s4 + $0x18] sm:$0xff] }
  0xf5   : > { %v392_v21 = vrot.slane %v391_v20, 1 }
  0xf7   : > { %v393_v22 = vmax.f32 %v391_v20, %v392_v21 }
  0xf9   : > { %v394_v23 = vsub.f32 %v387_v16, %v393_v22  ;;  %v549_v16 = vld [vmem:[%s1243_s4 + $0x8] sm:$0xff] }
  0xfb   : > { %v395_v24 = vmul.f32 1.442695, %v394_v23 }
  0xfd   : > { %880 = vpow2.f32 %v395_v24 }
 0x10a   : > { %v881_v25 = vpop.eup %880 }
 0x10b   : > { %v397_v26 = vrot.slane %v881_v25, 4 }
 0x10d   : > { %v398_v27 = vadd.f32 %v881_v25, %v397_v26 }
 0x10f   : > { %v399_v28 = vrot.slane %v398_v27, 2 }
 0x111   : > { %v400_v29 = vadd.f32 %v399_v28, %v398_v27 }
 0x113   : > { %v401_v30 = vrot.slane %v400_v29, 1 }
 0x115   : > { %v402_v31 = vadd.f32 %v401_v30, %v400_v29 }
 0x117   : > { %882 = vrcp.f32 %v402_v31 }
 0x124   : > { %v883_v34 = vpop.eup %882 }
 0x125   : > { %v404_v35 = vmul.f32 %v883_v34, %v881_v25 }
 0x127   : > { %799 = vmatpush3.xpose.msk.msra.mxu1 %vm411_vm3, %v404_v35  ;;  %405 = vst [vmem:[%s274_s28] sm:$0xff] %v404_v35 }
 0x12a   : > { %801 = vmatmul.mubr.f32.vlgmr.msra.gmra.mxu1 %v298_v6 }
 0x12b   : > { %803 = vmatprep.mubr.msk.f32.mxu1 %vm969_vm0, %v968_v0 }
 0x12e   : > { %804 = vmatmul.mubr.f32.gmra.mxu1 %v299_v5 }
 0x12f   : > { %806 = vmatprep.mubr.msk.f32.mxu1 %vm969_vm0, %v968_v0 }
 0x132   : > { %807 = vmatmul.mubr.f32.gmra.mxu1 %v1085_v4 }
 0x133   : > { %809 = vmatprep.mubr.msk.f32.mxu1 %vm969_vm0, %v968_v0 }
 0x136   : > { %810 = vmatmul.mubr.f32.gmra.mxu1 %v1083_v3 }
 0x137   : > { %812 = vmatprep.mubr.msk.f32.mxu1 %vm969_vm0, %v968_v0  ;;  %v533_v0 = vld [vmem:[%s1242_s3 + $0x8] sm:$0xff] }
 0x13a   : > { %813 = vmatmul.mubr.msk.f32.gmra.mxu1 %vm415_vm4, %v971_v37 }
 0x1ea   : > { %v489_v39 = vpop.f32.mrf.mxu1 }
 0x1eb   : > { %v513_v40 = vadd.f32 %v489_v39, %v418_v38 }
 0x1ec   : > { %v802_v41 = vpop.f32.mrf.mxu1 }
 0x1ed   : > { %519 = vst.msk [vmem:[#allocation2] sm:$0xff] %vm292_vm2, %v513_v40 }
 0x1ee   : > { %v494_v43 = vpop.f32.mrf.mxu1 }
 0x1ef   : > { %v514_v44 = vadd.f32 %v494_v43, %v419_v42 }
 0x1f0   : > { %v805_v45 = vpop.f32.mrf.mxu1 }
 0x1f1   : > { %520 = vst.msk [vmem:[#allocation2 + $0x8] sm:$0xff] %vm292_vm2, %v514_v44 }
 0x1f2   : > { %v499_v47 = vpop.f32.mrf.mxu1 }
 0x1f3   : > { %v515_v48 = vadd.f32 %v499_v47, %v420_v46 }
 0x1f4   : > { %v808_v49 = vpop.f32.mrf.mxu1  ;;  %v527_v7 = vld [vmem:[#allocation2] sm:$0xff] }
 0x1f5   : > { %521 = vst.msk [vmem:[#allocation2 + $0x10] sm:$0xff] %vm292_vm2, %v515_v48 }
 0x1f6   : > { %v504_v51 = vpop.f32.mrf.mxu1 }
 0x1f7   : > { %v516_v52 = vadd.f32 %v504_v51, %v421_v50 }
 0x1f8   : > { %v811_v53 = vpop.f32.mrf.mxu1  ;;  %v528_v8 = vld [vmem:[#allocation2 + $0x8] sm:$0xff] }
 0x1f9   : > { %522 = vst.msk [vmem:[#allocation2 + $0x18] sm:$0xff] %vm292_vm2, %v516_v52 }
 0x1fa   : > { %v509_v55 = vpop.f32.mrf.mxu1 }
 0x1fb   : > { %v517_v56 = vadd.f32 %v509_v55, %v422_v54 }
 0x1fc   : > { %v814_v57 = vpop.f32.mrf.mxu1  ;;  %v529_v9 = vld [vmem:[#allocation2 + $0x10] sm:$0xff] }
 0x1fd   : > { %523 = vst.msk [vmem:[#allocation2 + $0x20] sm:$0xff] %vm292_vm2, %v517_v56 }
 0x200   : > { %v530_v10 = vld [vmem:[#allocation2 + $0x18] sm:$0xff] }
 0x204   : > { %v531_v58 = vld [vmem:[#allocation2 + $0x20] sm:$0xff] }
 0x205   : > { %v556_v59 = vadd.f32 1e-09, %v531_v58  ;;  %v539_v63 = vrot.slane %v531_v58, %v538_v60 }
 0x207   : > { %v560_v61 = vrot.slane %v556_v59, %v538_v60  ;;  %v540_v3 = vmul.f32 %v539_v63, %v532_v62  ;;  %v541_v4 = vmul.f32 %v539_v63, %v533_v0  ;;  %v542_v5 = vmul.f32 %v539_v63, %v534_v1 }
 0x208   : > { %v543_v6 = vmul.f32 %v539_v63, %v535_v2 }
 0x209   : > { %884 = vrcp.f32 %v560_v61  ;;  %v544_v11 = vsub.f32 %v527_v7, %v540_v3  ;;  %v545_v12 = vsub.f32 %v528_v8, %v541_v4  ;;  %v546_v13 = vsub.f32 %v529_v9, %v542_v5 }
 0x20a   : > { %v547_v14 = vsub.f32 %v530_v10, %v543_v6 }
 0x20b   : > { %v552_v19 = vmul.f32 %v548_v15, %v544_v11  ;;  %v553_v20 = vmul.f32 %v549_v16, %v545_v12  ;;  %v554_v21 = vmul.f32 %v550_v17, %v546_v13 }
 0x20c   : > { %v555_v22 = vmul.f32 %v551_v18, %v547_v14 }
 0x216   : > { %v885_v23 = vpop.eup %884 }
 0x217   : > { %v562_v24 = vmul.f32 %v885_v23, %v552_v19  ;;  %v563_v25 = vmul.f32 %v885_v23, %v553_v20  ;;  %v564_v26 = vmul.f32 %v885_v23, %v554_v21  ;;  %v565_v27 = vmul.f32 %v885_v23, %v555_v22 }
 0x219   : > { %v566_v28 = vmul.f32 %v562_v24, %v562_v24  ;;  %v567_v29 = vmul.f32 %v563_v25, %v563_v25  ;;  %v568_v30 = vmul.f32 %v564_v26, %v564_v26  ;;  %v569_v31 = vmul.f32 %v565_v27, %v565_v27 }
 0x21b   : > { %v570_v32 = vsel %vm292_vm2, %v566_v28, 0.0  ;;  %v571_v33 = vsel %vm292_vm2, %v567_v29, 0.0  ;;  %v573_v35 = vsel %vm292_vm2, %v568_v30, 0.0  ;;  %v575_v37 = vsel %vm292_vm2, %v569_v31, 0.0 }
 0x21c   : > { %v572_v34 = vadd.f32 %v571_v33, %v570_v32 }
 0x21e   : > { %v574_v36 = vadd.f32 %v573_v35, %v572_v34 }
 0x220   : > { %v576_v38 = vadd.f32 %v575_v37, %v574_v36 }
 0x222   : > { %v577_v39 = vrot.slane %v576_v38, 4 }
 0x224   : > { %v578_v40 = vadd.f32 %v577_v39, %v576_v38 }
 0x226   : > { %v579_v41 = vrot.slane %v578_v40, 2 }
 0x228   : > { %v580_v42 = vadd.f32 %v579_v41, %v578_v40 }
 0x22a   : > { %v581_v43 = vrot.slane %v580_v42, 1 }
 0x22c   : > { %v582_v44 = vadd.f32 %v581_v43, %v580_v42 }
 0x22e   : > { %v583_v45 = vmax.f32 %v582_v44, 1e-24 }
 0x230   : > { %886 = vrsqrt.f32 %v583_v45 }
 0x23d   : > { %v887_v46 = vpop.eup %886 }
 0x23e   : > { %v1164_v47 = vmul.f32 %v887_v46, %v562_v24  ;;  %v1166_v48 = vmul.f32 %v887_v46, %v563_v25  ;;  %v1168_v49 = vmul.f32 %v887_v46, %v564_v26  ;;  %v1170_v50 = vmul.f32 %v887_v46, %v565_v27 }
 0x240   : > { %v589_v51 = vmul.f32 %v1164_v47, %v1164_v47  ;;  %v590_v52 = vmul.f32 %v1166_v48, %v1166_v48  ;;  %v591_v53 = vmul.f32 %v1168_v49, %v1168_v49  ;;  %v592_v54 = vmul.f32 %v1170_v50, %v1170_v50 }
 0x242   : > { %v593_v55 = vsel %vm292_vm2, %v589_v51, 0.0  ;;  %v594_v56 = vsel %vm292_vm2, %v590_v52, 0.0  ;;  %v596_v58 = vsel %vm292_vm2, %v591_v53, 0.0  ;;  %v598_v60 = vsel %vm292_vm2, %v592_v54, 0.0 }
 0x243   : > { %v595_v57 = vadd.f32 %v594_v56, %v593_v55 }
 0x245   : > { %v597_v59 = vadd.f32 %v596_v58, %v595_v57 }
 0x247   : > { %v599_v61 = vadd.f32 %v598_v60, %v597_v59 }
 0x249   : > { %600 = vadd.xlane.f32.xlu0 %v599_v61 }
 0x2d2   : > { %v601_v62 = vpop.xlane.xlu0 %600 }
 0x2d3   : > { %v602_v63 = vrot.slane %v601_v62, 4 }
 0x2d5   : > { %v603_v0 = vadd.f32 %v602_v63, %v601_v62 }
 0x2d7   : > { %v604_v1 = vrot.slane %v603_v0, 2 }
 0x2d8   : > { %903 = shalt.err (!%p900_p5)
}
 0x2d9   : > { %s904_s27 = scalar_lea.hbm %s643_s11, 128  ;;  %s908_s18 = scalar_lea.hbm %s1245_s6, 256 }
 0x2da   : > { %p905_p6 = scmp.ne.s32.totalorder %s643_s11, %s904_s27  ;;  %p909_p10 = scmp.lt.s32.totalorder %s643_s11, %s1245_s6 }
 0x2db   : > { %p910_p11 = scmp.lt.s32.totalorder %s908_s18, %s904_s27 }
 0x2dc   : > { %p906_p7 = pnand %p905_p6, %p1049_p4 }
 0x2dd   : > { %p911_p12 = por %p910_p11, %p909_p10 }
 0x2de   : > { %p907_p9 = pneg %p906_p7 }
 0x2e0   : > { %p912_p13 = pnand %p911_p12, %p907_p9 }
 0x2e2   : > { %915 = shalt.err (!%p912_p13)
}
 0x2e3   : > { %819 = dma.vmem_to_hbm [thread:$0]  (%p1049_p4), %s646_s19, 128, %s643_s11, %s628_s12   ;;  %v605_v2 = vadd.f32 %v604_v1, %v603_v0 }
 0x2e4   : > { %s973_s16 = smov 1e-24   ;;  %s287_s28 = scalar_lea.vmem %s1244_s5, %s762_s14 }
 0x2e5   : > { %v606_v3 = vrot.slane %v605_v2, 1 }
 0x2e7   : > { %v607_v4 = vadd.f32 %v606_v3, %v605_v2 }
 0x2e9   : > { %815 = vpush %v607_v4 }
 0x31a   : > { %s816_s15 = spop %815 }
 0x31b   : > { %s609_s17 = smax.f32 %s973_s16, %s816_s15 }
 0x31c   : > { %v610_v5 = vstv %s609_s17 }
 0x31d   : > { %888 = vrsqrt.f32 %v610_v5 }
 0x32a   : > { %v889_v6 = vpop.eup %888 }
 0x32b   : > { %817 = vpush %v889_v6 }
 0x35c   : > { %s818_s24 = spop %817 }
 0x35d   : > { %v613_v7 = vstv %s818_s24 }
 0x35e   : > { %v614_v8 = vmul.f32 %v613_v7, %v1164_v47  ;;  %v615_v9 = vmul.f32 %v613_v7, %v1166_v48  ;;  %v616_v10 = vmul.f32 %v613_v7, %v1168_v49  ;;  %v617_v11 = vmul.f32 %v613_v7, %v1170_v50 }
 0x360   : > { %618 = vst.msk [vmem:[%s287_s28] sm:$0xff] %vm292_vm2, %v614_v8  ;;  %619 = vst.msk [vmem:[%s287_s28 + $0x8] sm:$0xff] %vm292_vm2, %v615_v9 }
 0x361   : > { %620 = vst.msk [vmem:[%s287_s28 + $0x10] sm:$0xff] %vm292_vm2, %v616_v10  ;;  %621 = vst.msk [vmem:[%s287_s28 + $0x18] sm:$0xff] %vm292_vm2, %v617_v11 }
 0x362 PF: > { %p825_p4 = scmp.ge.s32.totalorder %s966_s26, 2  ;;  %s665_s7 = sand.u32 1, %s946_s21  }
 0x363   : > { %s666_s13 = scalar_lea.sflag [#allocation4], %s665_s7 }
 0x364   : > { %p822_p0 = pnand %p825_p4, %p1056_p8 }
 0x366   : > { %p823_p1 = pneg %p822_p0 }
 0x368   : > { %941 = dma.done.wait (%p823_p1), %s666_s13, 128  }
 0x369   : > { %943 = vsyncadd (%p823_p1), %s666_s13, 4294967168  ;;  %s20_s26 = sadd.s32 1, %s966_s26   ;;  %s1248_s21 = smov %s950_s22 }
 0x36a   : > { %p17_p2 = scmp.ge.s32.totalorder %s20_s26, 4   ;;  %s1249_s22 = smov %s954_s23 }
 0x36b   : > { %s1250_s23 = smov %s1062_s10  ;;  %s1251_s24 = smov %s962_s25 }
 0x36c   : > { %s1252_s25 = smov %s1254_s29  ;;  %19 = sbr.rel (!%p17_p2) target bundleno = 4 (0x4), region = 95 }
 0x371   :  { %671 = vsyncpa [#allocation4], 1 }
 0x372   :  { %673 = vsyncpa [#allocation4 + $0x1], 1 }

</bundles_post_ra>
